<compile_context>
chip_gen: v6e
topology: v6e:2x2x1
jax: 0.10.0
libtpu: 0.0.40
codegen_flags: <defaults>
</compile_context>

<pallas_src>
import functools

import jax
import jax.numpy as jnp
from jax.experimental import pallas as pl
from jax.experimental.pallas import tpu as pltpu


def _round_up(x: int, m: int) -> int:
    return (x + m - 1) // m * m


@functools.lru_cache(maxsize=None)
def _vmem_limit_bytes() -> int:
    # ~80% of per-core VMEM leaves headroom for Mosaic-internal scratch and
    # semaphores.  v7x: 64 MiB/TC -> ~51 MiB; v5e/v6e: 128 MiB -> ~102 MiB.
    try:
        cap = int(pltpu.get_tpu_info().vmem_capacity_bytes)
    except Exception:
        cap = 64 * 1024 * 1024  # conservative: assume smallest-VMEM generation
    return int(cap * 0.8)


def mlp_kernel(x_ref, w1_ref, b1_ref, w2_ref, b2_ref, o_ref, h_ref):
    # Compute the hidden layer once per batch tile (first output-feature tile)
    # and cache it in VMEM; every other j tile of the same batch tile reuses it.
    @pl.when(pl.program_id(1) == 0)
    def _():
        h = jnp.dot(x_ref[...], w1_ref[...], preferred_element_type=jnp.float32)
        h_ref[...] = jnp.maximum(h + b1_ref[...], 0.0)  # b1 is [1, D_hid] f32

    # out tile = h @ W2[:, j] + b2[j]; hidden cast to W2 dtype for the MXU
    # pass (exact for f32 weights, intentional downcast for bf16 weights).
    y = jnp.dot(h_ref[...].astype(w2_ref.dtype), w2_ref[...],
                preferred_element_type=jnp.float32)
    o_ref[...] = (y + b2_ref[...]).astype(o_ref.dtype)


def prepare_params(w1, b1, w2, b2):
    """Pad params ONCE (at init) to 128-lane multiples.

    Layout: w1 is [D_in, D_hid], w2 is [D_hid, D_out] (i.e. PyTorch
    nn.Linear weight.T).  Biases are kept f32, shaped [1, N], so they add
    directly onto the f32 MXU accumulator in-kernel.
    """
    D_in, D_hid = w1.shape
    D_out = w2.shape[1]
    D_in_p, D_hid_p, D_out_p = (_round_up(d, 128) for d in (D_in, D_hid, D_out))
    w1_p = jnp.pad(w1, ((0, D_in_p - D_in), (0, D_hid_p - D_hid)))
    w2_p = jnp.pad(w2, ((0, D_hid_p - D_hid), (0, D_out_p - D_out)))
    b1_p = jnp.pad(b1.astype(jnp.float32), (0, D_hid_p - D_hid)).reshape(1, D_hid_p)
    b2_p = jnp.pad(b2.astype(jnp.float32), (0, D_out_p - D_out)).reshape(1, D_out_p)
    return w1_p, b1_p, w2_p, b2_p


@functools.partial(jax.jit, static_argnames=("d_out", "tb", "tn"))
def mlp_forward_padded(x, w1_p, b1_p, w2_p, b2_p, *, d_out, tb=256, tn=256):
    """x: [B, D_in]; padded params from prepare_params(); d_out = true output width.

    Defaults tb/tn=256 fill the 256x256 MXU on v6e/v7x; pass tn=128 on v5e.
    """
    B, D_in = x.shape
    D_in_p, D_hid_p = w1_p.shape
    D_out_p = w2_p.shape[1]
    dt = x.dtype

    # ---- tile sizes (sublane/lane aligned, clamped to the problem) ----------
    sub = 16 if dt == jnp.bfloat16 else 8
    TB = min(tb, _round_up(B, sub))          # multiple of 8/16 by construction
    B_p = _round_up(B, TB)
    TN = min(tn, D_out_p)
    if D_out_p % TN != 0:                    # D_out_p is a multiple of 128
        TN = 128

    # Only pad x when actually needed (feature dim to match padded W1; batch
    # only if B doesn't divide into the batch tile).  Weights were padded once
    # at init, so no per-call HBM pass over the weight matrices.
    if (B_p, D_in_p) != (B, D_in):
        x = jnp.pad(x, ((0, B_p - B), (0, D_in_p - D_in)))

    nb = B_p // TB
    nj = D_out_p // TN
    w_bytes = jnp.dtype(w1_p.dtype).itemsize
    x_bytes = jnp.dtype(dt).itemsize
    cost = pl.CostEstimate(
        # first matmul done once per batch tile (h reused across j), second per tile
        flops=2 * B_p * D_hid_p * (D_in_p + D_out_p),
        transcendentals=0,
        bytes_accessed=(
            x_bytes * B_p * (D_in_p + D_out_p)        # x read, out written
            + w_bytes * D_in_p * D_hid_p              # W1 copied to VMEM once
            + w_bytes * nb * D_hid_p * D_out_p        # W2 re-streamed per batch tile
            + 4 * (D_hid_p + nb * D_out_p)            # biases
        ),
    )

    out_p = pl.pallas_call(
        mlp_kernel,
        out_shape=jax.ShapeDtypeStruct((B_p, D_out_p), dt),
        grid_spec=pltpu.PrefetchScalarGridSpec(
            num_scalar_prefetch=0,
            grid=(nb, nj),
            in_specs=[
                # x: one batch tile per grid row; index constant across j so the
                # pipeline doesn't re-DMA it per output tile.
                pl.BlockSpec((TB, D_in_p), lambda i, j: (i, 0)),
                # W1 / b1: whole-array single VMEM copy (no double buffering).
                pl.BlockSpec(memory_space=pltpu.MemorySpace.VMEM),
                pl.BlockSpec(memory_space=pltpu.MemorySpace.VMEM),
                # W2 / b2: one output-feature tile per grid column (pipelined).
                pl.BlockSpec((D_hid_p, TN), lambda i, j: (0, j)),
                pl.BlockSpec((1, TN), lambda i, j: (0, j)),
            ],
            out_specs=pl.BlockSpec((TB, TN), lambda i, j: (i, j)),
            # f32 hidden-activation cache, persists across grid steps.
            scratch_shapes=[pltpu.VMEM((TB, D_hid_p), jnp.float32)],
        ),
        compiler_params=pltpu.CompilerParams(
            # Batch tiles are independent (megacore-shardable on v7x); the j
            # axis reuses the per-batch-tile hidden scratch -> must be arbitrary.
            dimension_semantics=("parallel", "arbitrary"),
            vmem_limit_bytes=_vmem_limit_bytes(),
        ),
        cost_estimate=cost,
    )(x, w1_p, b1_p, w2_p, b2_p)

    return out_p[:B, :d_out]


def mlp_forward(x, w1, b1, w2, b2, **kw):
    """One-shot convenience wrapper. In a real training/serving loop, call
    prepare_params() once and mlp_forward_padded() per step instead."""
    w1_p, b1_p, w2_p, b2_p = prepare_params(w1, b1, w2, b2)
    return mlp_forward_padded(x, w1_p, b1_p, w2_p, b2_p, d_out=w2.shape[1], **kw)


def reference_mlp(x, w1, b1, w2, b2):
    h = jnp.maximum(x @ w1 + b1, 0.0)
    return h @ w2 + b2


if __name__ == "__main__":
    # Small shapes consistent with nn.Linear(input_size, hidden_size) ->
    # nn.Linear(hidden_size, output_size). Padded to 128-lane tiles internally.
    B, D_in, D_hid, D_out = 8, 32, 64, 16

    key = jax.random.PRNGKey(0)
    kx, kw1, kb1, kw2, kb2 = jax.random.split(key, 5)

    x = jax.random.normal(kx, (B, D_in), dtype=jnp.float32)
    # Deterministic "PyTorch-like" init (uniform(-1/sqrt(fan_in), 1/sqrt(fan_in))).
    lim1 = 1.0 / (D_in ** 0.5)
    lim2 = 1.0 / (D_hid ** 0.5)
    w1 = jax.random.uniform(kw1, (D_in, D_hid), jnp.float32, -lim1, lim1)
    b1 = jax.random.uniform(kb1, (D_hid,), jnp.float32, -lim1, lim1)
    w2 = jax.random.uniform(kw2, (D_hid, D_out), jnp.float32, -lim2, lim2)
    b2 = jax.random.uniform(kb2, (D_out,), jnp.float32, -lim2, lim2)

    # Pad / lay out the weights once (init time), then run the fused kernel.
    w1_p, b1_p, w2_p, b2_p = prepare_params(w1, b1, w2, b2)
    out = mlp_forward_padded(x, w1_p, b1_p, w2_p, b2_p, d_out=D_out)
    out = jax.block_until_ready(out)

    ref = reference_mlp(x, w1, b1, w2, b2)
    assert out.shape == (B, D_out)
    assert jnp.allclose(out, ref, atol=1e-4, rtol=1e-4), (
        float(jnp.max(jnp.abs(out - ref))))

    print("KERNEL_OK")
</pallas_src>

<mosaic_0001>
module attributes {stable_mosaic.version = 11 : i64} {
  func.func @mlp_kernel(%arg0: i32, %arg1: i32, %arg2: memref<8x128xf32, #tpu.memory_space<vmem>>, %arg3: memref<128x128xf32, #tpu.memory_space<vmem>>, %arg4: memref<1x128xf32, #tpu.memory_space<vmem>>, %arg5: memref<128x128xf32, #tpu.memory_space<vmem>>, %arg6: memref<1x128xf32, #tpu.memory_space<vmem>>, %arg7: memref<8x128xf32, #tpu.memory_space<vmem>>, %arg8: memref<8x128xf32, #tpu.memory_space<vmem>>) attributes {dimension_semantics = [#tpu.dimension_semantics<parallel>, #tpu.dimension_semantics<arbitrary>], iteration_bounds = array<i64: 1, 1>, scalar_prefetch = 0 : i64, scratch_operands = 1 : i64, tpu.core_type = #tpu.core_type<tc>, window_params = [{transform_indices = @transform_0, window_bounds = array<i64: 8, 128>}, {pipeline_mode = #tpu.pipeline_mode<synchronous>, transform_indices = @transform_1, window_bounds = array<i64: 128, 128>}, {pipeline_mode = #tpu.pipeline_mode<synchronous>, transform_indices = @transform_2, window_bounds = array<i64: 1, 128>}, {transform_indices = @transform_3, window_bounds = array<i64: 128, 128>}, {transform_indices = @transform_4, window_bounds = array<i64: 1, 128>}, {transform_indices = @transform_5, window_bounds = array<i64: 8, 128>}]} {
    %c0_i32 = arith.constant 0 : i32
    %0 = arith.cmpi eq, %arg1, %c0_i32 : i32
    %1 = arith.extui %0 : i1 to i32
    %c0_i32_0 = arith.constant 0 : i32
    %2 = arith.cmpi ne, %1, %c0_i32_0 : i32
    scf.if %2 {
      %c0_8 = arith.constant 0 : index
      %c0_9 = arith.constant 0 : index
      %10 = vector.load %arg2[%c0_8, %c0_9] : memref<8x128xf32, #tpu.memory_space<vmem>>, vector<8x128xf32>
      %c0_10 = arith.constant 0 : index
      %c0_11 = arith.constant 0 : index
      %11 = vector.load %arg3[%c0_10, %c0_11] : memref<128x128xf32, #tpu.memory_space<vmem>>, vector<128x128xf32>
      %cst_12 = arith.constant dense<0.000000e+00> : vector<8x128xf32>
      %12 = tpu.matmul %10, %11, %cst_12 {dimension_numbers = #tpu.dot_dimension_numbers<[1], [0], [0], [1], [0, 0, 1, 1], [], []>} : vector<8x128xf32>, vector<128x128xf32>, vector<8x128xf32> -> vector<8x128xf32>
      %c0_13 = arith.constant 0 : index
      %c0_14 = arith.constant 0 : index
      %13 = vector.load %arg4[%c0_13, %c0_14] : memref<1x128xf32, #tpu.memory_space<vmem>>, vector<1x128xf32>
      %14 = vector.broadcast %13 : vector<1x128xf32> to vector<8x128xf32>
      %15 = arith.addf %12, %14 : vector<8x128xf32>
      %cst_15 = arith.constant 0.000000e+00 : f32
      %16 = vector.broadcast %cst_15 : f32 to vector<8x128xf32>
      %17 = arith.maximumf %15, %16 : vector<8x128xf32>
      %c0_16 = arith.constant 0 : index
      %c0_17 = arith.constant 0 : index
      %18 = vector.load %arg8[%c0_16, %c0_17] : memref<8x128xf32, #tpu.memory_space<vmem>>, vector<8x128xf32>
      tpu.vector_store %arg8[%c0_16, %c0_17], %17 {strides = array<i32>} : memref<8x128xf32, #tpu.memory_space<vmem>>, vector<8x128xf32>,
    } else {
    }
    %c0 = arith.constant 0 : index
    %c0_1 = arith.constant 0 : index
    %3 = vector.load %arg8[%c0, %c0_1] : memref<8x128xf32, #tpu.memory_space<vmem>>, vector<8x128xf32>
    %c0_2 = arith.constant 0 : index
    %c0_3 = arith.constant 0 : index
    %4 = vector.load %arg5[%c0_2, %c0_3] : memref<128x128xf32, #tpu.memory_space<vmem>>, vector<128x128xf32>
    %cst = arith.constant dense<0.000000e+00> : vector<8x128xf32>
    %5 = tpu.matmul %3, %4, %cst {dimension_numbers = #tpu.dot_dimension_numbers<[1], [0], [0], [1], [0, 0, 1, 1], [], []>} : vector<8x128xf32>, vector<128x128xf32>, vector<8x128xf32> -> vector<8x128xf32>
    %c0_4 = arith.constant 0 : index
    %c0_5 = arith.constant 0 : index
    %6 = vector.load %arg6[%c0_4, %c0_5] : memref<1x128xf32, #tpu.memory_space<vmem>>, vector<1x128xf32>
    %7 = vector.broadcast %6 : vector<1x128xf32> to vector<8x128xf32>
    %8 = arith.addf %5, %7 : vector<8x128xf32>
    %c0_6 = arith.constant 0 : index
    %c0_7 = arith.constant 0 : index
    %9 = vector.load %arg7[%c0_6, %c0_7] : memref<8x128xf32, #tpu.memory_space<vmem>>, vector<8x128xf32>
    tpu.vector_store %arg7[%c0_6, %c0_7], %8 {strides = array<i32>} : memref<8x128xf32, #tpu.memory_space<vmem>>, vector<8x128xf32>,
    return
  }
  func.func @transform_0(%arg0: i32, %arg1: i32) -> (i32, i32) {
    %c0_i32 = arith.constant 0 : i32
    %c0_i32_0 = arith.constant 0 : i32
    return %arg0, %c0_i32 : i32, i32
  }
  func.func @transform_1(%arg0: i32, %arg1: i32) -> (i32, i32) {
    %c0_i32 = arith.constant 0 : i32
    %c0_i32_0 = arith.constant 0 : i32
    %c0_i32_1 = arith.constant 0 : i32
    return %c0_i32, %c0_i32_0 : i32, i32
  }
  func.func @transform_2(%arg0: i32, %arg1: i32) -> (i32, i32) {
    %c0_i32 = arith.constant 0 : i32
    %c0_i32_0 = arith.constant 0 : i32
    %c0_i32_1 = arith.constant 0 : i32
    return %c0_i32, %c0_i32_0 : i32, i32
  }
  func.func @transform_3(%arg0: i32, %arg1: i32) -> (i32, i32) {
    %c0_i32 = arith.constant 0 : i32
    %c0_i32_0 = arith.constant 0 : i32
    return %c0_i32, %arg1 : i32, i32
  }
  func.func @transform_4(%arg0: i32, %arg1: i32) -> (i32, i32) {
    %c0_i32 = arith.constant 0 : i32
    %c0_i32_0 = arith.constant 0 : i32
    return %c0_i32, %arg1 : i32, i32
  }
  func.func @transform_5(%arg0: i32, %arg1: i32) -> (i32, i32) {
    %c0_i32 = arith.constant 0 : i32
    return %arg0, %arg1 : i32, i32
  }
}

</mosaic_0001>

<bundles_post_ra>
// kernel: mlp_forward_padded.1
= control target key start
LH: loop header
LB: loop body
LE: loop exit
PB: predicated region body
PF: predicated region fallthrough
CT: control target
= control target key end

     0   :  { %10 = vsyncpa [#allocation4], 0  ;;  %s528_s0 = inlined_call_operand.vmem [shape: f32[8,128], index: 0, kind: input, shape index: {}]   ;;  %s529_s1 = inlined_call_operand.hbm [shape: f32[128,128], index: 1, kind: input, shape index: {}]   ;;  %s530_s2 = inlined_call_operand.vmem [shape: f32[1,128], index: 2, kind: input, shape index: {}]   ;;  %s531_s3 = inlined_call_operand.hbm [shape: f32[128,128], index: 3, kind: input, shape index: {}]   ;;  %s532_s4 = inlined_call_operand.vmem [shape: f32[1,128], index: 4, kind: input, shape index: {}]   ;;  %s533_s5 = inlined_call_operand.hbm [shape: f32[8,128], index: 5, kind: output, shape index: {}]  }
   0x1   :  { %11 = vsyncpa [#allocation7], 0 }
   0x2   :  { %12 = vsyncpa [#allocation5], 0  ;;  %s439_s18 = smov [#allocation3]  }
   0x3   :  { %s20_s19 = sshll.u32 %s439_s18, 4  ;;  %s21_s19 = int_to_ptr.vmem [resolvable:$true] %s20_s19 }
   0x4   :  { %s381_s20 = scalar_lea.vmem %s21_s19, 2048  ;;  %p386_p1 = scmp.lt.s32.totalorder %s21_s19, %s21_s19 }
   0x5   :  { %p382_p0 = scmp.ne.s32.totalorder %s21_s19, %s381_s20  ;;  %p387_p2 = scmp.lt.s32.totalorder %s381_s20, %s381_s20 }
   0x7   :  { %p388_p3 = por %p387_p2, %p386_p1 }
   0x9   :  { %p389_p4 = pnand %p388_p3, %p382_p0 }
   0xb   :  { %392 = shalt.err (!%p389_p4)
}
   0xc   :  { %s440_s21 = smov 128   ;;  %s441_s22 = smov 8  }
   0xd   :  { %26 = dma.hbm_to_vmem [thread:$0]  %s529_s1, 2048, %s21_s19, [#allocation4], %s440_s21, %s440_s21, %s441_s22  }
   0xe   :  { %s442_s25 = smov [#allocation6]  }
   0xf   :  { %s34_s26 = sshll.u32 %s442_s25, 4  ;;  %s35_s26 = int_to_ptr.vmem [resolvable:$true] %s34_s26 }
  0x10   :  { %s401_s27 = scalar_lea.vmem %s35_s26, 2048  ;;  %p406_p6 = scmp.lt.s32.totalorder %s35_s26, %s35_s26 }
  0x11   :  { %p402_p5 = scmp.ne.s32.totalorder %s35_s26, %s401_s27  ;;  %p407_p7 = scmp.lt.s32.totalorder %s401_s27, %s401_s27 }
  0x13   :  { %p408_p8 = por %p407_p7, %p406_p6 }
  0x15   :  { %p409_p9 = pnand %p408_p8, %p402_p5 }
  0x17   :  { %412 = shalt.err (!%p409_p9)
}
  0x18   :  { %40 = dma.hbm_to_vmem [thread:$0]  %s531_s3, 2048, %s35_s26, [#allocation7], %s440_s21, %s440_s21, %s441_s22  }
  0x19   :  { %433 = dma.done.wait [#allocation4], 2048  }
  0x1a   :  { %434 = vsyncadd [#allocation4], 4294965248 }
  0x1b   :  { %435 = dma.done.wait [#allocation7], 2048  }
  0x1c   :  { %436 = vsyncadd [#allocation7], 4294965248  ;;  %v443_v0 = vmov 0.0   ;;  %vm444_vm0 = vmmov 0   ;;  %v69_v1 = vld [vmem:[#allocation3 + $0x78] sm:$0xff]  ;;  %v68_v2 = vld [vmem:[#allocation3 + $0x70] sm:$0xff] }
  0x1d   :  { %296 = vmatprep.subr.mxu0 %v443_v0  ;;  %328 = vmatprep.mubr.msk.f32.mxu0 %vm444_vm0, %v443_v0  ;;  %v67_v3 = vld [vmem:[#allocation3 + $0x68] sm:$0xff]  ;;  %v66_v4 = vld [vmem:[#allocation3 + $0x60] sm:$0xff]  ;;  %v165_v5 = vld [vmem:[#allocation6 + $0x78] sm:$0xff]  ;;  %s445_s8 = smov [#allocation8]  }
  0x1e   :  { %331 = vmatprep.subr.mxu1 %v443_v0  ;;  %363 = vmatprep.mubr.msk.f32.mxu1 %vm444_vm0, %v443_v0  ;;  %v65_v6 = vld [vmem:[#allocation3 + $0x58] sm:$0xff]  ;;  %v164_v7 = vld [vmem:[#allocation6 + $0x70] sm:$0xff]  ;;  %v163_v8 = vld [vmem:[#allocation6 + $0x68] sm:$0xff]  ;;  %s250_s9 = sshll.u32 %s445_s8, 4  ;;  %s251_s9 = int_to_ptr.vmem [resolvable:$true] %s250_s9 }
  0x1f   :  { %297 = vmatpush3.msra.mxu0 %v69_v1  ;;  %332 = vmatpush3.msra.mxu1 %v165_v5  ;;  %v64_v9 = vld [vmem:[#allocation3 + $0x50] sm:$0xff]  ;;  %v162_v10 = vld [vmem:[#allocation6 + $0x60] sm:$0xff]  ;;  %v63_v11 = vld [vmem:[#allocation3 + $0x48] sm:$0xff]  ;;  %s413_s10 = scalar_lea.vmem %s251_s9, 128  ;;  %p418_p11 = scmp.lt.s32.totalorder %s251_s9, %s251_s9 }
  0x20   :  { %298 = vmatprep.subr.mxu0 %v443_v0  ;;  %333 = vmatprep.subr.mxu1 %v443_v0  ;;  %v161_v12 = vld [vmem:[#allocation6 + $0x58] sm:$0xff]  ;;  %v62_v13 = vld [vmem:[#allocation3 + $0x40] sm:$0xff]  ;;  %v160_v14 = vld [vmem:[#allocation6 + $0x50] sm:$0xff]  ;;  %p414_p10 = scmp.ne.s32.totalorder %s251_s9, %s413_s10  ;;  %p419_p12 = scmp.lt.s32.totalorder %s413_s10, %s413_s10 }
  0x21   :  { %299 = vmatpush3.msra.mxu0 %v68_v2  ;;  %334 = vmatpush3.msra.mxu1 %v164_v7  ;;  %v61_v15 = vld [vmem:[#allocation3 + $0x38] sm:$0xff]  ;;  %v159_v16 = vld [vmem:[#allocation6 + $0x48] sm:$0xff]  ;;  %v60_v17 = vld [vmem:[#allocation3 + $0x30] sm:$0xff] }
  0x22   :  { %300 = vmatprep.subr.mxu0 %v443_v0  ;;  %335 = vmatprep.subr.mxu1 %v443_v0  ;;  %v158_v18 = vld [vmem:[#allocation6 + $0x40] sm:$0xff]  ;;  %v59_v19 = vld [vmem:[#allocation3 + $0x28] sm:$0xff]  ;;  %v157_v20 = vld [vmem:[#allocation6 + $0x38] sm:$0xff]  ;;  %p420_p13 = por %p419_p12, %p418_p11 }
  0x23   :  { %301 = vmatpush3.msra.mxu0 %v67_v3  ;;  %336 = vmatpush3.msra.mxu1 %v163_v8  ;;  %v58_v21 = vld [vmem:[#allocation3 + $0x20] sm:$0xff]  ;;  %v156_v22 = vld [vmem:[#allocation6 + $0x30] sm:$0xff]  ;;  %v57_v23 = vld [vmem:[#allocation3 + $0x18] sm:$0xff] }
  0x24   :  { %302 = vmatprep.subr.mxu0 %v443_v0  ;;  %337 = vmatprep.subr.mxu1 %v443_v0  ;;  %v155_v24 = vld [vmem:[#allocation6 + $0x28] sm:$0xff]  ;;  %v56_v25 = vld [vmem:[#allocation3 + $0x10] sm:$0xff]  ;;  %v154_v26 = vld [vmem:[#allocation6 + $0x20] sm:$0xff]  ;;  %p421_p0 = pnand %p420_p13, %p414_p10 }
  0x25   :  { %303 = vmatpush3.msra.mxu0 %v66_v4  ;;  %338 = vmatpush3.msra.mxu1 %v162_v10  ;;  %v55_v27 = vld [vmem:[#allocation3 + $0x8] sm:$0xff]  ;;  %v153_v28 = vld [vmem:[#allocation6 + $0x18] sm:$0xff]  ;;  %v54_v29 = vld [vmem:[#allocation3] sm:$0xff] }
  0x26   :  { %304 = vmatprep.subr.mxu0 %v443_v0  ;;  %339 = vmatprep.subr.mxu1 %v443_v0  ;;  %v53_v30 = vld [vmem:[%s528_s0] sm:$0xff]  ;;  %v152_v31 = vld [vmem:[#allocation6 + $0x10] sm:$0xff]  ;;  %v151_v32 = vld [vmem:[#allocation6 + $0x8] sm:$0xff] }
  0x27   :  { %305 = vmatpush3.msra.mxu0 %v65_v6  ;;  %340 = vmatpush3.msra.mxu1 %v161_v12  ;;  %v150_v33 = vld [vmem:[#allocation6] sm:$0xff] }
  0x28   :  { %306 = vmatprep.subr.mxu0 %v443_v0  ;;  %341 = vmatprep.subr.mxu1 %v443_v0  ;;  %v260_v34 = vld [vmem:[%s530_s2] ss:$0 sm:$0xff] }
  0x29   :  { %307 = vmatpush3.msra.mxu0 %v64_v9  ;;  %342 = vmatpush3.msra.mxu1 %v160_v14  ;;  %v261_v39 = vld [vmem:[%s532_s4] ss:$0 sm:$0xff] }
  0x2a   :  { %308 = vmatprep.subr.mxu0 %v443_v0  ;;  %343 = vmatprep.subr.mxu1 %v443_v0 }
  0x2b   :  { %309 = vmatpush3.msra.mxu0 %v63_v11  ;;  %344 = vmatpush3.msra.mxu1 %v159_v16 }
  0x2c   :  { %310 = vmatprep.subr.mxu0 %v443_v0  ;;  %345 = vmatprep.subr.mxu1 %v443_v0 }
  0x2d   :  { %311 = vmatpush3.msra.mxu0 %v62_v13  ;;  %346 = vmatpush3.msra.mxu1 %v158_v18 }
  0x2e   :  { %312 = vmatprep.subr.mxu0 %v443_v0  ;;  %347 = vmatprep.subr.mxu1 %v443_v0 }
  0x2f   :  { %313 = vmatpush3.msra.mxu0 %v61_v15  ;;  %348 = vmatpush3.msra.mxu1 %v157_v20 }
  0x30   :  { %314 = vmatprep.subr.mxu0 %v443_v0  ;;  %349 = vmatprep.subr.mxu1 %v443_v0 }
  0x31   :  { %315 = vmatpush3.msra.mxu0 %v60_v17  ;;  %350 = vmatpush3.msra.mxu1 %v156_v22 }
  0x32   :  { %316 = vmatprep.subr.mxu0 %v443_v0  ;;  %351 = vmatprep.subr.mxu1 %v443_v0 }
  0x33   :  { %317 = vmatpush3.msra.mxu0 %v59_v19  ;;  %352 = vmatpush3.msra.mxu1 %v155_v24 }
  0x34   :  { %318 = vmatprep.subr.mxu0 %v443_v0  ;;  %353 = vmatprep.subr.mxu1 %v443_v0 }
  0x35   :  { %319 = vmatpush3.msra.mxu0 %v58_v21  ;;  %354 = vmatpush3.msra.mxu1 %v154_v26 }
  0x36   :  { %320 = vmatprep.subr.mxu0 %v443_v0  ;;  %355 = vmatprep.subr.mxu1 %v443_v0 }
  0x37   :  { %321 = vmatpush3.msra.mxu0 %v57_v23  ;;  %356 = vmatpush3.msra.mxu1 %v153_v28 }
  0x38   :  { %322 = vmatprep.subr.mxu0 %v443_v0  ;;  %357 = vmatprep.subr.mxu1 %v443_v0 }
  0x39   :  { %323 = vmatpush3.msra.mxu0 %v56_v25  ;;  %358 = vmatpush3.msra.mxu1 %v152_v31 }
  0x3a   :  { %324 = vmatprep.subr.mxu0 %v443_v0  ;;  %359 = vmatprep.subr.mxu1 %v443_v0 }
  0x3b   :  { %325 = vmatpush3.msra.mxu0 %v55_v27  ;;  %360 = vmatpush3.msra.mxu1 %v151_v32 }
  0x3c   :  { %326 = vmatprep.subr.mxu0 %v443_v0  ;;  %361 = vmatprep.subr.mxu1 %v443_v0 }
  0x3d   :  { %327 = vmatpush3.msra.mxu0 %v54_v29  ;;  %362 = vmatpush3.msra.mxu1 %v150_v33 }
  0x3e   :  { %329 = vmatmul.mubr.f32.vlgmr.msra.gmra.mxu0 %v53_v30 }
  0xfe   :  { %v143_v35 = vpop.f32.mrf.mxu0 }
  0xff   :  { %v144_v36 = vadd.f32 %v260_v34, %v143_v35 }
 0x100   :  { %v330_v37 = vpop.f32.mrf.mxu0 }
 0x101   :  { %v147_v38 = vmax.f32 %v144_v36, 0.0 }
 0x103   :  { %364 = vmatmul.mubr.f32.vlgmr.msra.gmra.mxu1 %v147_v38 }
 0x1c3   :  { %v239_v40 = vpop.f32.mrf.mxu1 }
 0x1c4   :  { %v240_v41 = vadd.f32 %v261_v39, %v239_v40 }
 0x1c5   :  { %v365_v42 = vpop.f32.mrf.mxu1 }
 0x1c6   :  { %243 = vst [vmem:[#allocation8] sm:$0xff] %v240_v41 }
 0x1c7   :  { %424 = shalt.err (!%p421_p0)
}
 0x1c8   :  { %253 = dma.vmem_to_hbm [thread:$0]  %s251_s9, 128, %s533_s5, [#allocation5]  }
 0x1c9   :  { %437 = dma.done.wait [#allocation5], 128  }
 0x1ca   :  { %438 = vsyncadd [#allocation5], 4294967168 }
 0x1cb   :  { %257 = vsyncpa [#allocation4], 1 }
 0x1cc   :  { %258 = vsyncpa [#allocation7], 1 }
 0x1cd   :  { %259 = vsyncpa [#allocation5], 1 }

</bundles_post_ra>
